<compile_context>
chip_gen: v7x
topology: tpu7x:2x2x1
jax: 0.10.0
libtpu: 0.0.40
codegen_flags: <defaults>
</compile_context>

<pallas_src>
import functools

import jax
import jax.numpy as jnp
from jax.experimental import pallas as pl
from jax.experimental.pallas import tpu as pltpu

_LANES = 128
# per-element VMEM cost ~= 2*itemsize (double-buffered input) + 4 B f32 temps
_VMEM_TILE_BUDGET = 24 * 1024 * 1024


def _round_up(x, m):
    return (x + m - 1) // m * m


def _pick_tiles(n, c, itemsize):
    # sublane packing granularity: 8 rows for 32-bit, 16 for bf16, 32 for 8-bit
    row_align = {4: 8, 2: 16, 1: 32}.get(itemsize, 8)

    # class tile: full C when narrower than one vreg row, otherwise a large
    # multiple of 128 (ragged tail masked in-kernel, never padded in HBM).
    if c <= _LANES:
        tile_c = c
    else:
        tile_c = min((c // _LANES) * _LANES, 4096)

    per_elem = 2 * itemsize + 4
    tile_n = 512
    while tile_n > row_align and tile_n * tile_c * per_elem > _VMEM_TILE_BUDGET:
        tile_n //= 2
    # megacore balance: >= 2 row tiles whenever the batch is larger than one
    # aligned row group (v7x has 2 TensorCores sharing the "parallel" axis).
    while tile_n > row_align and tile_n >= _round_up(n, row_align):
        tile_n //= 2
    return max(row_align, tile_n), tile_c


def _label_smoothing_kernel(x_ref, tgt_ref, out_ref, m_sc, l_sc, s_sc,
                            *, confidence, smoothing, n_valid, c_valid):
    i = pl.program_id(0)          # row-tile index (parallel)
    j = pl.program_id(1)          # class-tile index (reduction, innermost)

    tn, tc = x_ref.shape
    lanes = m_sc.shape[-1]        # 128, or C itself when C < 128
    ng = tc // lanes              # lane groups per class tile
    ragged_c = (c_valid % tc) != 0     # static: last class tile is partial
    ragged_n = (n_valid % tn) != 0     # static: last row tile is partial

    smooth_w = smoothing / c_valid
    tgt_local = tgt_ref[...].astype(jnp.int32) - j * tc               # (tn, 1)
    lane_iota = jax.lax.broadcasted_iota(jnp.int32, (tn, lanes), 1)   # hoisted

    # ---- init per-lane running stats on the first class step ----------------
    @pl.when(j == 0)
    def _():
        m_sc[...] = jnp.full_like(m_sc, -jnp.inf)
        l_sc[...] = jnp.zeros_like(l_sc)
        s_sc[...] = jnp.zeros_like(s_sc)

    m_old = m_sc[...]

    # ---- pass 1: per-lane max over this tile (pure VPU, no XLU) -------------
    m_new = m_old
    for k in range(ng):
        xg = x_ref[:, k * lanes:(k + 1) * lanes].astype(jnp.float32)
        if ragged_c:
            valid = lane_iota < (c_valid - j * tc - k * lanes)
            xg = jnp.where(valid, xg, -jnp.inf)
        m_new = jnp.maximum(m_new, xg)

    # ---- pass 2: rescaled per-lane exp-sum + fused weighted sum -------------
    l_new = l_sc[...] * jnp.exp(m_old - m_new)
    s_new = s_sc[...]
    for k in range(ng):
        xg = x_ref[:, k * lanes:(k + 1) * lanes].astype(jnp.float32)
        match = lane_iota == (tgt_local - k * lanes)
        coef = jnp.where(match, confidence + smooth_w, smooth_w)
        if ragged_c:
            valid = lane_iota < (c_valid - j * tc - k * lanes)
            xg = jnp.where(valid, xg, -jnp.inf)
            s_new = s_new + jnp.where(valid, coef * xg, 0.0)
        else:
            s_new = s_new + coef * xg
        l_new = l_new + jnp.exp(xg - m_new)

    m_sc[...] = m_new
    l_sc[...] = l_new
    s_sc[...] = s_new

    # ---- finalize: cross-lane (XLU) reductions, once per row tile -----------
    @pl.when(j == pl.num_programs(1) - 1)
    def _():
        m_row = jnp.max(m_new, axis=-1, keepdims=True)                 # (tn, 1)
        l_row = jnp.sum(l_new * jnp.exp(m_new - m_row), axis=-1, keepdims=True)
        s_row = jnp.sum(s_new, axis=-1, keepdims=True)
        loss = m_row + jnp.log(l_row) - s_row
        if ragged_n:
            row_ids = i * tn + jax.lax.broadcasted_iota(jnp.int32, (tn, 1), 0)
            loss = jnp.where(row_ids < n_valid, loss, 0.0)
        out_ref[...] = loss


def label_smoothing_loss(x, target, smoothing=0.1):
    """x: [N, C] float (f32 or bf16) logits, target: [N] int class ids."""
    confidence = 1.0 - smoothing
    n, c = x.shape
    itemsize = jnp.dtype(x.dtype).itemsize
    tile_n, tile_c = _pick_tiles(n, c, itemsize)
    lanes = min(_LANES, tile_c)

    tgt2d = target.astype(jnp.int32).reshape(n, 1)
    grid = (pl.cdiv(n, tile_n), pl.cdiv(c, tile_c))

    kernel = functools.partial(
        _label_smoothing_kernel,
        confidence=float(confidence), smoothing=float(smoothing),
        n_valid=n, c_valid=c)

    per_row = pl.pallas_call(
        kernel,
        out_shape=jax.ShapeDtypeStruct((n, 1), jnp.float32),
        grid=grid,
        in_specs=[
            pl.BlockSpec((tile_n, tile_c), lambda i, j: (i, j)),   # logits tile
            pl.BlockSpec((tile_n, 1), lambda i, j: (i, 0)),        # targets (resident over j)
        ],
        out_specs=pl.BlockSpec((tile_n, 1), lambda i, j: (i, 0)),  # per-row losses
        scratch_shapes=[pltpu.VMEM((tile_n, lanes), jnp.float32)] * 3,  # m, l, s
        compiler_params=pltpu.CompilerParams(
            dimension_semantics=("parallel", "arbitrary"),
            vmem_limit_bytes=48 * 1024 * 1024,
        ),
        cost_estimate=pl.CostEstimate(
            flops=6 * n * c,
            transcendentals=n * c,
            bytes_accessed=n * c * itemsize + 8 * n),
    )(x, tgt2d)

    # tiny final mean over the *global* batch size outside the kernel
    return jnp.sum(per_row) / n


def _reference(x, target, smoothing=0.1):
    confidence = 1.0 - smoothing
    logprobs = jax.nn.log_softmax(x.astype(jnp.float32), axis=-1)
    nll = -jnp.take_along_axis(logprobs, target[:, None], axis=-1)[:, 0]
    smooth = -jnp.mean(logprobs, axis=-1)
    return jnp.mean(confidence * nll + smoothing * smooth)


if __name__ == "__main__":
    key = jax.random.PRNGKey(0)
    kx, kt, kx2, kt2 = jax.random.split(key, 4)
    smoothing = 0.1

    # small, fully aligned case
    N, C = 8, 32
    x = jax.random.normal(kx, (N, C), dtype=jnp.float32)
    target = jax.random.randint(kt, (N,), 0, C, dtype=jnp.int32)
    loss = jax.block_until_ready(label_smoothing_loss(x, target, smoothing=smoothing))
    ref = _reference(x, target, smoothing=smoothing)
    assert jnp.allclose(loss, ref, atol=1e-5, rtol=1e-5), (loss, ref)

    # bf16 logits path (halves HBM traffic; compute stays f32 in the kernel)
    x_bf16 = x.astype(jnp.bfloat16)
    loss_bf16 = jax.block_until_ready(
        label_smoothing_loss(x_bf16, target, smoothing=smoothing))
    ref_bf16 = _reference(x_bf16.astype(jnp.float32), target, smoothing=smoothing)
    assert jnp.allclose(loss_bf16, ref_bf16, atol=1e-4, rtol=1e-4), (loss_bf16, ref_bf16)

    # ragged rows + ragged streamed class tiles (exercises both tail masks)
    N2, C2 = 20, 300
    x2 = jax.random.normal(kx2, (N2, C2), dtype=jnp.float32)
    target2 = jax.random.randint(kt2, (N2,), 0, C2, dtype=jnp.int32)
    loss2 = jax.block_until_ready(label_smoothing_loss(x2, target2, smoothing=smoothing))
    ref2 = _reference(x2, target2, smoothing=smoothing)
    assert jnp.allclose(loss2, ref2, atol=1e-5, rtol=1e-5), (loss2, ref2)

    print("KERNEL_OK")
</pallas_src>

<mosaic_0001>
module attributes {stable_mosaic.version = 11 : i64} {
  func.func @_label_smoothing_kernel(%arg0: i32, %arg1: i32, %arg2: memref<8x32xf32, #tpu.memory_space<vmem>>, %arg3: memref<8x1xi32, #tpu.memory_space<vmem>>, %arg4: memref<8x1xf32, #tpu.memory_space<vmem>>, %arg5: memref<8x32xf32, #tpu.memory_space<vmem>>, %arg6: memref<8x32xf32, #tpu.memory_space<vmem>>, %arg7: memref<8x32xf32, #tpu.memory_space<vmem>>) attributes {dimension_semantics = [#tpu.dimension_semantics<parallel>, #tpu.dimension_semantics<arbitrary>], iteration_bounds = array<i64: 1, 1>, scalar_prefetch = 0 : i64, scratch_operands = 3 : i64, tpu.core_type = #tpu.core_type<tc>, window_params = [{transform_indices = @transform_0, window_bounds = array<i64: 8, 32>}, {transform_indices = @transform_1, window_bounds = array<i64: 8, 1>}, {transform_indices = @transform_2, window_bounds = array<i64: 8, 1>}]} {
    %c0 = arith.constant 0 : index
    %c0_0 = arith.constant 0 : index
    %0 = vector.load %arg3[%c0, %c0_0] : memref<8x1xi32, #tpu.memory_space<vmem>>, vector<8x1xi32>
    %c32_i32 = arith.constant 32 : i32
    %1 = arith.muli %arg1, %c32_i32 : i32
    %2 = vector.broadcast %1 : i32 to vector<8x1xi32>
    %3 = arith.subi %0, %2 : vector<8x1xi32>
    %4 = tpu.iota {dimensions = array<i32: 1>} : vector<8x32xi32>
    %c0_i32 = arith.constant 0 : i32
    %5 = arith.cmpi eq, %arg1, %c0_i32 : i32
    %6 = arith.extui %5 : i1 to i32
    %c0_i32_1 = arith.constant 0 : i32
    %7 = arith.cmpi ne, %6, %c0_i32_1 : i32
    scf.if %7 {
      %cst_22 = arith.constant 0xFF800000 : f32
      %35 = vector.broadcast %cst_22 : f32 to vector<8x32xf32>
      %c0_23 = arith.constant 0 : index
      %c0_24 = arith.constant 0 : index
      %36 = vector.load %arg5[%c0_23, %c0_24] : memref<8x32xf32, #tpu.memory_space<vmem>>, vector<8x32xf32>
      tpu.vector_store %arg5[%c0_23, %c0_24], %35 {strides = array<i32>} : memref<8x32xf32, #tpu.memory_space<vmem>>, vector<8x32xf32>,
      %cst_25 = arith.constant 0.000000e+00 : f32
      %37 = vector.broadcast %cst_25 : f32 to vector<8x32xf32>
      %c0_26 = arith.constant 0 : index
      %c0_27 = arith.constant 0 : index
      %38 = vector.load %arg6[%c0_26, %c0_27] : memref<8x32xf32, #tpu.memory_space<vmem>>, vector<8x32xf32>
      tpu.vector_store %arg6[%c0_26, %c0_27], %37 {strides = array<i32>} : memref<8x32xf32, #tpu.memory_space<vmem>>, vector<8x32xf32>,
      %cst_28 = arith.constant 0.000000e+00 : f32
      %39 = vector.broadcast %cst_28 : f32 to vector<8x32xf32>
      %c0_29 = arith.constant 0 : index
      %c0_30 = arith.constant 0 : index
      %40 = vector.load %arg7[%c0_29, %c0_30] : memref<8x32xf32, #tpu.memory_space<vmem>>, vector<8x32xf32>
      tpu.vector_store %arg7[%c0_29, %c0_30], %39 {strides = array<i32>} : memref<8x32xf32, #tpu.memory_space<vmem>>, vector<8x32xf32>,
    } else {
    }
    %c0_2 = arith.constant 0 : index
    %c0_3 = arith.constant 0 : index
    %8 = vector.load %arg5[%c0_2, %c0_3] : memref<8x32xf32, #tpu.memory_space<vmem>>, vector<8x32xf32>
    %c0_4 = arith.constant 0 : index
    %c0_5 = arith.constant 0 : index
    %9 = vector.load %arg2[%c0_4, %c0_5] : memref<8x32xf32, #tpu.memory_space<vmem>>, vector<8x32xf32>
    %10 = arith.maximumf %8, %9 : vector<8x32xf32>
    %c0_6 = arith.constant 0 : index
    %c0_7 = arith.constant 0 : index
    %11 = vector.load %arg6[%c0_6, %c0_7] : memref<8x32xf32, #tpu.memory_space<vmem>>, vector<8x32xf32>
    %12 = arith.subf %8, %10 : vector<8x32xf32>
    %13 = math.exp %12 : vector<8x32xf32>
    %14 = arith.mulf %11, %13 : vector<8x32xf32>
    %c0_8 = arith.constant 0 : index
    %c0_9 = arith.constant 0 : index
    %15 = vector.load %arg7[%c0_8, %c0_9] : memref<8x32xf32, #tpu.memory_space<vmem>>, vector<8x32xf32>
    %c0_10 = arith.constant 0 : index
    %c0_11 = arith.constant 0 : index
    %16 = vector.load %arg2[%c0_10, %c0_11] : memref<8x32xf32, #tpu.memory_space<vmem>>, vector<8x32xf32>
    %c0_i32_12 = arith.constant 0 : i32
    %17 = vector.broadcast %c0_i32_12 : i32 to vector<8x1xi32>
    %18 = arith.subi %3, %17 : vector<8x1xi32>
    %19 = vector.broadcast %18 : vector<8x1xi32> to vector<8x32xi32>
    %20 = arith.cmpi eq, %4, %19 : vector<8x32xi32>
    %cst = arith.constant 0.903124988 : f32
    %cst_13 = arith.constant 3.125000e-03 : f32
    %21 = vector.broadcast %cst : f32 to vector<8x32xf32>
    %22 = vector.broadcast %cst_13 : f32 to vector<8x32xf32>
    %23 = arith.select %20, %21, %22 : vector<8x32xi1>, vector<8x32xf32>
    %24 = arith.mulf %23, %16 : vector<8x32xf32>
    %25 = arith.addf %15, %24 : vector<8x32xf32>
    %26 = arith.subf %16, %10 : vector<8x32xf32>
    %27 = math.exp %26 : vector<8x32xf32>
    %28 = arith.addf %14, %27 : vector<8x32xf32>
    %c0_14 = arith.constant 0 : index
    %c0_15 = arith.constant 0 : index
    %29 = vector.load %arg5[%c0_14, %c0_15] : memref<8x32xf32, #tpu.memory_space<vmem>>, vector<8x32xf32>
    tpu.vector_store %arg5[%c0_14, %c0_15], %10 {strides = array<i32>} : memref<8x32xf32, #tpu.memory_space<vmem>>, vector<8x32xf32>,
    %c0_16 = arith.constant 0 : index
    %c0_17 = arith.constant 0 : index
    %30 = vector.load %arg6[%c0_16, %c0_17] : memref<8x32xf32, #tpu.memory_space<vmem>>, vector<8x32xf32>
    tpu.vector_store %arg6[%c0_16, %c0_17], %28 {strides = array<i32>} : memref<8x32xf32, #tpu.memory_space<vmem>>, vector<8x32xf32>,
    %c0_18 = arith.constant 0 : index
    %c0_19 = arith.constant 0 : index
    %31 = vector.load %arg7[%c0_18, %c0_19] : memref<8x32xf32, #tpu.memory_space<vmem>>, vector<8x32xf32>
    tpu.vector_store %arg7[%c0_18, %c0_19], %25 {strides = array<i32>} : memref<8x32xf32, #tpu.memory_space<vmem>>, vector<8x32xf32>,
    %c0_i32_20 = arith.constant 0 : i32
    %32 = arith.cmpi eq, %arg1, %c0_i32_20 : i32
    %33 = arith.extui %32 : i1 to i32
    %c0_i32_21 = arith.constant 0 : i32
    %34 = arith.cmpi ne, %33, %c0_i32_21 : i32
    scf.if %34 {
      %cst_22 = arith.constant dense<0xFF800000> : vector<8xf32>
      %35 = vector.multi_reduction <maximumf>, %10, %cst_22 [1] : vector<8x32xf32> to vector<8xf32>
      %36 = vector.shape_cast %35 : vector<8xf32> to vector<8x1xf32>
      %37 = vector.broadcast %36 : vector<8x1xf32> to vector<8x32xf32>
      %38 = arith.subf %10, %37 : vector<8x32xf32>
      %39 = math.exp %38 : vector<8x32xf32>
      %40 = arith.mulf %28, %39 : vector<8x32xf32>
      %cst_23 = arith.constant dense<0.000000e+00> : vector<8xf32>
      %41 = vector.multi_reduction <add>, %40, %cst_23 [1] : vector<8x32xf32> to vector<8xf32>
      %42 = vector.shape_cast %41 : vector<8xf32> to vector<8x1xf32>
      %cst_24 = arith.constant dense<0.000000e+00> : vector<8xf32>
      %43 = vector.multi_reduction <add>, %25, %cst_24 [1] : vector<8x32xf32> to vector<8xf32>
      %44 = vector.shape_cast %43 : vector<8xf32> to vector<8x1xf32>
      %45 = math.log %42 : vector<8x1xf32>
      %46 = arith.addf %36, %45 : vector<8x1xf32>
      %47 = arith.subf %46, %44 : vector<8x1xf32>
      %c0_25 = arith.constant 0 : index
      %c0_26 = arith.constant 0 : index
      %48 = vector.load %arg4[%c0_25, %c0_26] : memref<8x1xf32, #tpu.memory_space<vmem>>, vector<8x1xf32>
      tpu.vector_store %arg4[%c0_25, %c0_26], %47 {strides = array<i32>} : memref<8x1xf32, #tpu.memory_space<vmem>>, vector<8x1xf32>,
    } else {
    }
    return
  }
  func.func @transform_0(%arg0: i32, %arg1: i32) -> (i32, i32) {
    %c0_i32 = arith.constant 0 : i32
    return %arg0, %arg1 : i32, i32
  }
  func.func @transform_1(%arg0: i32, %arg1: i32) -> (i32, i32) {
    %c0_i32 = arith.constant 0 : i32
    %c0_i32_0 = arith.constant 0 : i32
    return %arg0, %c0_i32 : i32, i32
  }
  func.func @transform_2(%arg0: i32, %arg1: i32) -> (i32, i32) {
    %c0_i32 = arith.constant 0 : i32
    %c0_i32_0 = arith.constant 0 : i32
    return %arg0, %c0_i32 : i32, i32
  }
}

</mosaic_0001>

<bundles_post_ra>
// kernel: tpu_custom_call.1
= control target key start
LH: loop header
LB: loop body
LE: loop exit
PB: predicated region body
PF: predicated region fallthrough
CT: control target
= control target key end

     0   :  { %vm21_vm0 = vcmask 261120   ;;  %v88_v0 = vmov -inf   ;;  %v89_v1 = vmov 0   ;;  %v90_v10 = vmov 0.0   ;;  %s125_s0 = inlined_call_operand.vmem [shape: f32[8,32], index: 0, kind: input, shape index: {}]   ;;  %s126_s1 = inlined_call_operand.vmem [shape: s32[8,1], index: 1, kind: input, shape index: {}]   ;;  %s127_s2 = inlined_call_operand.vmem [shape: f32[8,1], index: 2, kind: output, shape index: {}]  }
   0x1   :  { %22 = vst.msk [vmem:[#allocation2] sm:$0xff] %vm21_vm0, %v88_v0  ;;  %79 = vset.pattern.permute.xlu0 %v89_v1  ;;  %v26_v2 = vld [vmem:[%s125_s0] sm:$0xff]  ;;  %23 = vst.msk [vmem:[#allocation3] sm:$0xff] %vm21_vm0, %v90_v10  ;;  %v15_v19 = vlaneseq  ;;  %v91_v23 = vmov 0.003125   ;;  %vm69_vm2 = vcmask 7168  }
   0x2   :  { %24 = vst.msk [vmem:[#allocation4] sm:$0xff] %vm21_vm0, %v90_v10  ;;  %v11_v11 = vld [vmem:[%s126_s1] sm:$0xff] }
   0x3   :  { %v16_v21 = vand.u32 127, %v15_v19 }
   0x8   :  { %v25_v3 = vld [vmem:[#allocation2] sm:$0xff]  ;;  %v28_v13 = vld [vmem:[#allocation3] sm:$0xff] }
   0x9   :  { %v27_v4 = vmax.f32 %v25_v3, %v26_v2  ;;  %v33_v25 = vld [vmem:[#allocation4] sm:$0xff] }
   0xb   :  { %v52_v5 = vsel %vm21_vm0, %v27_v4, -inf  ;;  %46 = vst.msk [vmem:[#allocation2] sm:$0xff] %vm21_vm0, %v27_v4  ;;  %v29_v6 = vsub.f32 %v25_v3, %v27_v4  ;;  %v41_v8 = vsub.f32 %v26_v2, %v27_v4 }
   0xc   :  { %53 = vmax.xlane.f32.xlu0 %v52_v5 }
   0xd   :  { %v30_v7 = vmul.f32 1.442695, %v29_v6  ;;  %v42_v9 = vmul.f32 1.442695, %v41_v8 }
   0xf   :  { %80 = vpow2.f32 %v30_v7 }
  0x10   :  { %82 = vpow2.f32 %v42_v9 }
  0x19   :  { %v81_v12 = vpop.eup %80 }
  0x1a   :  { %v32_v14 = vmul.f32 %v81_v12, %v28_v13  ;;  %v83_v15 = vpop.eup %82 }
  0x1c   :  { %v44_v16 = vadd.f32 %v83_v15, %v32_v14 }
  0x1e   :  { %47 = vst.msk [vmem:[#allocation3] sm:$0xff] %vm21_vm0, %v44_v16 }
  0x22   :  { %35 = vperm.xlu0 %79, %v11_v11  }
  0x99   :  { %v54_v17 = vpop.xlane.xlu0 %53 }
  0x9a   :  { %v55_v18 = vsub.f32 %v27_v4, %v54_v17 }
  0x9c   :  { %v56_v20 = vmul.f32 1.442695, %v55_v18 }
  0x9e   :  { %84 = vpow2.f32 %v56_v20 }
  0xa1   :  { %v36_v22 = vpop.permute.xlu0 %35 }
  0xa2   :  { %vm37_vm1 = vcmp.eq.s32.totalorder %v16_v21, %v36_v22 }
  0xa3   :  { %v38_v24 = vsel %vm37_vm1, 0.903125, %v91_v23 }
  0xa4   :  { %v39_v26 = vmul.f32 %v38_v24, %v26_v2 }
  0xa6   :  { %v40_v27 = vadd.f32 %v39_v26, %v33_v25 }
  0xa8   :  { %v85_v28 = vpop.eup %84  ;;  %48 = vst.msk [vmem:[#allocation4] sm:$0xff] %vm21_vm0, %v40_v27  ;;  %v62_v31 = vsel %vm21_vm0, %v40_v27, 0.0 }
  0xa9   :  { %v58_v29 = vmul.f32 %v85_v28, %v44_v16 }
  0xab   :  { %v59_v30 = vsel %vm21_vm0, %v58_v29, 0.0 }
  0xac   :  { %60 = vadd.xlane.f32.xlu1 %v59_v30 }
  0xb0   :  { %63 = vadd.xlane.f32.xlu1 %v62_v31 }
 0x139   :  { %v61_v32 = vpop.xlane.xlu1 %60 }
 0x13a   :  { %86 = vlog2.f32 %v61_v32 }
 0x13d   :  { %v64_v35 = vpop.xlane.xlu1 %63 }
 0x144   :  { %v87_v33 = vpop.eup %86 }
 0x145   :  { %v66_v34 = vmul.f32 0.6931472, %v87_v33 }
 0x147   :  { %v67_v36 = vadd.f32 %v66_v34, %v54_v17 }
 0x149   :  { %v68_v37 = vsub.f32 %v67_v36, %v64_v35 }
 0x14b   :  { %70 = vst.msk [vmem:[%s127_s2] sm:$0xff] %vm69_vm2, %v68_v37 }

</bundles_post_ra>
